<compile_context>
chip_gen: v6e
topology: v6e:2x2x1
jax: 0.10.0
libtpu: 0.0.40
codegen_flags: <defaults>
</compile_context>

<pallas_src>
import math

import jax
import jax.numpy as jnp
from jax.experimental import pallas as pl
from jax.experimental.pallas import tpu as pltpu


def _round_up(v, m):
    return (v + m - 1) // m * m


def _make_kernel(n_true, n_pad, c_out_true, has_res_proj):
    sqrt_c = float(math.sqrt(c_out_true))
    inv_n = 1.0 / float(n_true)
    eps_sq = 1e-4 * 1e-4  # F.normalize eps, squared (applied pre-rsqrt)

    def _silu(a):
        return a * jax.nn.sigmoid(a)

    def _pixel_norm(a):
        # F.normalize(x, dim=channel, eps=1e-4) * sqrt(C_true); padded channels are 0,
        # so they do not perturb the per-column sum of squares.
        # 1/max(||x||, eps) == rsqrt(max(sum(x^2), eps^2))  -> EUP rsqrt, no divide.
        s = jnp.sum(a * a, axis=0, keepdims=True)
        return a * (sqrt_c * jax.lax.rsqrt(jnp.maximum(s, eps_sq)))

    def kernel(*refs):
        if has_res_proj:
            (x_ref, w1_ref, b1_ref, w2_ref, b2_ref,
             wse1_ref, bse1_ref, wse2_ref, bse2_ref,
             wres_ref, bres_ref, o_ref) = refs
        else:
            (x_ref, w1_ref, b1_ref, w2_ref, b2_ref,
             wse1_ref, bse1_ref, wse2_ref, bse2_ref, o_ref) = refs

        x = x_ref[0]                                           # (C_in_p, N_p), native dtype

        lane = jax.lax.broadcasted_iota(jnp.int32, (1, n_pad), 1)
        first_col = lane == 0
        last_col = lane == (n_pad - 1)

        def mask_invalid(a):
            # zero the length-padding columns (keeps conv halos and SE mean exact)
            if n_true == n_pad:
                return a
            return jnp.where(lane < n_true, a, 0.0)

        def conv3(a, w_ref, b_ref):
            # a: (Ca_p, N_p); w_ref: (C_out_p, 3*Ca_p) tap-major fused; b_ref: (C_out_p, 1)
            a = a.astype(w_ref.dtype)                          # feed MXU in param dtype
            # lane shifts via XLU roll; zero the wrapped boundary column (conv zero pad)
            a_m1 = jnp.where(first_col, 0.0, pltpu.roll(a, 1, axis=1))          # a[:, j-1]
            a_p1 = jnp.where(last_col, 0.0, pltpu.roll(a, n_pad - 1, axis=1))   # a[:, j+1]
            stacked = jnp.concatenate([a_m1, a, a_p1], axis=0)  # (3*Ca_p, N_p)
            y = jnp.dot(w_ref[...], stacked, preferred_element_type=jnp.float32)
            return y + b_ref[...]

        # block1 / block2: Conv1d(k=3,pad=1) -> PixelNorm(channel) -> SiLU (dropout=0)
        h = mask_invalid(_silu(_pixel_norm(conv3(x, w1_ref, b1_ref))))
        h = mask_invalid(_silu(_pixel_norm(conv3(h, w2_ref, b2_ref))))

        # SqueezeExcite: mean over true length -> Linear -> SiLU -> Linear -> Sigmoid
        avg = jnp.sum(h, axis=1, keepdims=True) * inv_n        # (C_out_p, 1)
        z = _silu(jnp.dot(wse1_ref[...], avg.astype(wse1_ref.dtype),
                          preferred_element_type=jnp.float32) + bse1_ref[...])
        g = jax.nn.sigmoid(jnp.dot(wse2_ref[...], z.astype(wse2_ref.dtype),
                                   preferred_element_type=jnp.float32) + bse2_ref[...])
        h = h * g                                              # (C_out_p, N_p)

        # residual: 1x1 conv only when dim != dim_out, otherwise plain add (Identity)
        if has_res_proj:
            res = jnp.dot(wres_ref[...], x.astype(wres_ref.dtype),
                          preferred_element_type=jnp.float32) + bres_ref[...]
        else:
            res = x.astype(jnp.float32)

        o_ref[0] = (h + res).astype(o_ref.dtype)

    return kernel


def pack_params(p, compute_dtype=None):
    """One-time packing of logical (torch-layout) params into the kernel layout:
    fused 3-tap conv weights, channel padding to multiples of 8, biases as (C,1) f32."""
    w1 = p['w1']                                  # (dim_out, dim, 3)
    dim_out, dim = int(w1.shape[0]), int(w1.shape[1])
    dim_inner = int(p['wse1'].shape[0])
    has_res_proj = 'wres' in p
    dtype = compute_dtype if compute_dtype is not None else w1.dtype

    c_in_p = _round_up(dim, 8)
    c_out_p = _round_up(dim_out, 8)
    d_in_p = _round_up(dim_inner, 8)

    def pad2(a, r, c):
        return jnp.pad(a, ((0, r - a.shape[0]), (0, c - a.shape[1])))

    def col(b, r):                                # (n,) -> (r, 1), zero-padded
        return jnp.pad(b.reshape(-1, 1), ((0, r - b.shape[0]), (0, 0)))

    def fuse_conv(w, ci_p, co_p):
        # (Co, Ci, 3) -> (Co_p, 3*Ci_p), contraction index = tap * Ci_p + in_channel
        w = jnp.transpose(w, (0, 2, 1))           # (Co, 3, Ci)
        w = jnp.pad(w, ((0, co_p - w.shape[0]), (0, 0), (0, ci_p - w.shape[2])))
        return w.reshape(co_p, 3 * ci_p)

    packed = {
        'w1': fuse_conv(p['w1'], c_in_p, c_out_p).astype(dtype),
        'b1': col(p['b1'], c_out_p).astype(jnp.float32),
        'w2': fuse_conv(p['w2'], c_out_p, c_out_p).astype(dtype),
        'b2': col(p['b2'], c_out_p).astype(jnp.float32),
        'wse1': pad2(p['wse1'], d_in_p, c_out_p).astype(dtype),
        'bse1': col(p['bse1'], d_in_p).astype(jnp.float32),
        'wse2': pad2(p['wse2'], c_out_p, d_in_p).astype(dtype),
        'bse2': col(p['bse2'], c_out_p).astype(jnp.float32),
    }
    if has_res_proj:
        packed['wres'] = pad2(p['wres'], c_out_p, c_in_p).astype(dtype)
        packed['bres'] = col(p['bres'], c_out_p).astype(jnp.float32)
    packed['meta'] = dict(dim=dim, dim_out=dim_out, dim_inner=dim_inner,
                          c_in_p=c_in_p, c_out_p=c_out_p,
                          has_res_proj=has_res_proj)
    return packed


def resnet_block(x, packed, *, interpret=False):
    meta = packed['meta']
    c_in, c_out = meta['dim'], meta['dim_out']
    c_in_p, c_out_p = meta['c_in_p'], meta['c_out_p']
    has_res_proj = meta['has_res_proj']

    B, C, N = x.shape
    assert C == c_in, "channel mismatch between x and params"
    n_pad = _round_up(max(N, 128), 128)           # lane-dense output slab

    x_p = x
    if (c_in_p, n_pad) != (C, N):
        x_p = jnp.pad(x, ((0, 0), (0, c_in_p - C), (0, n_pad - N)))

    param_names = ['w1', 'b1', 'w2', 'b2', 'wse1', 'bse1', 'wse2', 'bse2']
    if has_res_proj:
        param_names += ['wres', 'bres']
    args = [packed[k] for k in param_names]

    def full_spec(a):
        # full-array block, same block index every grid step -> DMA'd once, stays resident
        nd = a.ndim
        return pl.BlockSpec(a.shape, lambda b, _nd=nd: (0,) * _nd)

    in_specs = [pl.BlockSpec((1, c_in_p, n_pad), lambda b: (b, 0, 0))]
    in_specs += [full_spec(a) for a in args]

    kernel = _make_kernel(N, n_pad, c_out, has_res_proj)

    # crude VMEM budget: double-buffered in/out tiles + params + f32 intermediates
    itemsize = jnp.dtype(x.dtype).itemsize
    est = 4 * n_pad * (3 * c_in_p + 10 * c_out_p) * 4            # f32 intermediates
    est += 2 * sum(int(a.size) * jnp.dtype(a.dtype).itemsize for a in args)
    est += 4 * n_pad * (c_in_p + c_out_p) * itemsize             # 2x in + 2x out tiles
    vmem_limit = int(min(64 * 2 ** 20, max(16 * 2 ** 20, 2 * est)))

    out = pl.pallas_call(
        kernel,
        out_shape=jax.ShapeDtypeStruct((B, c_out_p, n_pad), x.dtype),
        grid_spec=pltpu.PrefetchScalarGridSpec(
            num_scalar_prefetch=0,
            grid=(B,),
            in_specs=in_specs,
            out_specs=pl.BlockSpec((1, c_out_p, n_pad), lambda b: (b, 0, 0)),
        ),
        compiler_params=pltpu.CompilerParams(
            dimension_semantics=("parallel",),
            vmem_limit_bytes=vmem_limit,
        ),
        interpret=interpret,
    )(x_p, *args)

    return out[:, :c_out, :N]


def init_params(key, dim, dim_out=None, reduction_factor=4, min_dim=16):
    """Logical (torch-layout) parameters: Conv1d weights (Co, Ci, 3), Linear (out, in)."""
    dim_out = dim_out if dim_out is not None else dim
    dim_inner = max(dim_out // reduction_factor, min_dim)
    ks = jax.random.split(key, 10)

    def u(k, shape, fan_in):
        bound = 1.0 / math.sqrt(fan_in)
        return jax.random.uniform(k, shape, jnp.float32, -bound, bound)

    p = {
        'w1': u(ks[0], (dim_out, dim, 3), dim * 3),
        'b1': u(ks[1], (dim_out,), dim * 3),
        'w2': u(ks[2], (dim_out, dim_out, 3), dim_out * 3),
        'b2': u(ks[3], (dim_out,), dim_out * 3),
        'wse1': u(ks[4], (dim_inner, dim_out), dim_out),
        'bse1': u(ks[5], (dim_inner,), dim_out),
        'wse2': u(ks[6], (dim_out, dim_inner), dim_inner),
        'bse2': u(ks[7], (dim_out,), dim_inner),
    }
    if dim != dim_out:
        p['wres'] = u(ks[8], (dim_out, dim, 1), dim)[:, :, 0]
        p['bres'] = u(ks[9], (dim_out,), dim)
    return p


def reference(x, p):
    """Pure-JAX reference of the same forward (mask=None), for validation."""
    hp = jax.lax.Precision.HIGHEST

    def conv3(a, w, b):  # a: (B,C,N), w: (Co,Ci,3), b: (Co,)
        n = a.shape[2]
        xp = jnp.pad(a, ((0, 0), (0, 0), (1, 1)))
        y = sum(jnp.einsum('oi,bin->bon', w[:, :, t], xp[:, :, t:t + n], precision=hp)
                for t in range(3))
        return y + b[None, :, None]

    def pixel_norm(a, eps=1e-4):
        nrm = jnp.sqrt(jnp.sum(a * a, axis=1, keepdims=True))
        return a / jnp.maximum(nrm, eps) * math.sqrt(a.shape[1])

    def silu(a):
        return a * jax.nn.sigmoid(a)

    h = silu(pixel_norm(conv3(x, p['w1'], p['b1'])))
    h = silu(pixel_norm(conv3(h, p['w2'], p['b2'])))
    avg = jnp.mean(h, axis=2)                                   # (B, Co)
    z = silu(avg @ p['wse1'].T + p['bse1'])
    g = jax.nn.sigmoid(z @ p['wse2'].T + p['bse2'])
    h = h * g[:, :, None]
    if 'wres' in p:
        res = jnp.einsum('oi,bin->bon', p['wres'], x, precision=hp) + p['bres'][None, :, None]
    else:
        res = x
    return h + res


if __name__ == "__main__":
    key = jax.random.PRNGKey(0)
    kx, kp, kx2, kp2 = jax.random.split(key, 4)

    # Case 1: dim != dim_out (1x1-conv residual path)
    B, dim, dim_out, N = 2, 4, 8, 16
    x = jax.random.normal(kx, (B, dim, N), dtype=jnp.float32)
    params = init_params(kp, dim, dim_out)
    out = jax.block_until_ready(resnet_block(x, pack_params(params)))
    ref = reference(x, params)
    assert out.shape == (B, dim_out, N)
    assert jnp.allclose(out, ref, rtol=1e-4, atol=1e-5), "mismatch vs reference (proj residual)"

    # Case 2: dim == dim_out (Identity residual path, no residual matmul in kernel)
    B2, dim2, N2 = 2, 8, 24
    x2 = jax.random.normal(kx2, (B2, dim2, N2), dtype=jnp.float32)
    params2 = init_params(kp2, dim2)
    out2 = jax.block_until_ready(resnet_block(x2, pack_params(params2)))
    ref2 = reference(x2, params2)
    assert out2.shape == (B2, dim2, N2)
    assert jnp.allclose(out2, ref2, rtol=1e-4, atol=1e-5), "mismatch vs reference (identity residual)"

    print("KERNEL_OK")
</pallas_src>

<mosaic_0001>
module attributes {stable_mosaic.version = 11 : i64} {
  func.func @kernel(%arg0: i32, %arg1: memref<1x8x128xf32, #tpu.memory_space<vmem>>, %arg2: memref<8x24xf32, #tpu.memory_space<vmem>>, %arg3: memref<8x1xf32, #tpu.memory_space<vmem>>, %arg4: memref<8x24xf32, #tpu.memory_space<vmem>>, %arg5: memref<8x1xf32, #tpu.memory_space<vmem>>, %arg6: memref<16x8xf32, #tpu.memory_space<vmem>>, %arg7: memref<16x1xf32, #tpu.memory_space<vmem>>, %arg8: memref<8x16xf32, #tpu.memory_space<vmem>>, %arg9: memref<8x1xf32, #tpu.memory_space<vmem>>, %arg10: memref<8x8xf32, #tpu.memory_space<vmem>>, %arg11: memref<8x1xf32, #tpu.memory_space<vmem>>, %arg12: memref<1x8x128xf32, #tpu.memory_space<vmem>>) attributes {dimension_semantics = [#tpu.dimension_semantics<parallel>], iteration_bounds = array<i64: 2>, scalar_prefetch = 0 : i64, scratch_operands = 0 : i64, tpu.core_type = #tpu.core_type<tc>, window_params = [{transform_indices = @transform_0, window_bounds = array<i64: 1, 8, 128>}, {pipeline_mode = #tpu.pipeline_mode<synchronous>, transform_indices = @transform_1, window_bounds = array<i64: 8, 24>}, {pipeline_mode = #tpu.pipeline_mode<synchronous>, transform_indices = @transform_2, window_bounds = array<i64: 8, 1>}, {pipeline_mode = #tpu.pipeline_mode<synchronous>, transform_indices = @transform_3, window_bounds = array<i64: 8, 24>}, {pipeline_mode = #tpu.pipeline_mode<synchronous>, transform_indices = @transform_4, window_bounds = array<i64: 8, 1>}, {pipeline_mode = #tpu.pipeline_mode<synchronous>, transform_indices = @transform_5, window_bounds = array<i64: 16, 8>}, {pipeline_mode = #tpu.pipeline_mode<synchronous>, transform_indices = @transform_6, window_bounds = array<i64: 16, 1>}, {pipeline_mode = #tpu.pipeline_mode<synchronous>, transform_indices = @transform_7, window_bounds = array<i64: 8, 16>}, {pipeline_mode = #tpu.pipeline_mode<synchronous>, transform_indices = @transform_8, window_bounds = array<i64: 8, 1>}, {pipeline_mode = #tpu.pipeline_mode<synchronous>, transform_indices = @transform_9, window_bounds = array<i64: 8, 8>}, {pipeline_mode = #tpu.pipeline_mode<synchronous>, transform_indices = @transform_10, window_bounds = array<i64: 8, 1>}, {transform_indices = @transform_11, window_bounds = array<i64: 1, 8, 128>}]} {
    %c0 = arith.constant 0 : index
    %c0_0 = arith.constant 0 : index
    %c0_1 = arith.constant 0 : index
    %0 = vector.load %arg1[%c0, %c0_0, %c0_1] : memref<1x8x128xf32, #tpu.memory_space<vmem>>, vector<1x8x128xf32>
    %1 = vector.shape_cast %0 : vector<1x8x128xf32> to vector<8x128xf32>
    %2 = tpu.iota {dimensions = array<i32: 1>} : vector<1x128xi32>
    %c0_i32 = arith.constant 0 : i32
    %3 = vector.broadcast %c0_i32 : i32 to vector<1x128xi32>
    %4 = arith.cmpi eq, %2, %3 : vector<1x128xi32>
    %c127_i32 = arith.constant 127 : i32
    %5 = vector.broadcast %c127_i32 : i32 to vector<1x128xi32>
    %6 = arith.cmpi eq, %2, %5 : vector<1x128xi32>
    %c1_i32 = arith.constant 1 : i32
    %7 = tpu.dynamic_rotate %1 by %c1_i32 dim 1 : vector<8x128xf32>, i32 -> vector<8x128xf32>
    %cst = arith.constant 0.000000e+00 : f32
    %8 = vector.shape_cast %4 : vector<1x128xi1> to vector<1x128xi1>
    %9 = vector.broadcast %8 : vector<1x128xi1> to vector<8x128xi1>
    %10 = vector.broadcast %cst : f32 to vector<8x128xf32>
    %11 = arith.select %9, %10, %7 : vector<8x128xi1>, vector<8x128xf32>
    %c127_i32_2 = arith.constant 127 : i32
    %12 = tpu.dynamic_rotate %1 by %c127_i32_2 dim 1 : vector<8x128xf32>, i32 -> vector<8x128xf32>
    %cst_3 = arith.constant 0.000000e+00 : f32
    %13 = vector.shape_cast %6 : vector<1x128xi1> to vector<1x128xi1>
    %14 = vector.broadcast %13 : vector<1x128xi1> to vector<8x128xi1>
    %15 = vector.broadcast %cst_3 : f32 to vector<8x128xf32>
    %16 = arith.select %14, %15, %12 : vector<8x128xi1>, vector<8x128xf32>
    %17 = tpu.concatenate %11, %1, %16 in 0 : vector<8x128xf32>, vector<8x128xf32>, vector<8x128xf32> -> vector<24x128xf32>
    %c0_4 = arith.constant 0 : index
    %c0_5 = arith.constant 0 : index
    %18 = vector.load %arg2[%c0_4, %c0_5] : memref<8x24xf32, #tpu.memory_space<vmem>>, vector<8x24xf32>
    %cst_6 = arith.constant dense<0.000000e+00> : vector<8x128xf32>
    %19 = tpu.matmul %18, %17, %cst_6 {dimension_numbers = #tpu.dot_dimension_numbers<[1], [0], [0], [1], [0, 0, 1, 1], [], []>} : vector<8x24xf32>, vector<24x128xf32>, vector<8x128xf32> -> vector<8x128xf32>
    %c0_7 = arith.constant 0 : index
    %c0_8 = arith.constant 0 : index
    %20 = vector.load %arg3[%c0_7, %c0_8] : memref<8x1xf32, #tpu.memory_space<vmem>>, vector<8x1xf32>
    %21 = vector.broadcast %20 : vector<8x1xf32> to vector<8x128xf32>
    %22 = arith.addf %19, %21 : vector<8x128xf32>
    %23 = arith.mulf %22, %22 : vector<8x128xf32>
    %cst_9 = arith.constant dense<0.000000e+00> : vector<128xf32>
    %24 = vector.multi_reduction <add>, %23, %cst_9 [0] : vector<8x128xf32> to vector<128xf32>
    %25 = vector.shape_cast %24 : vector<128xf32> to vector<1x128xf32>
    %cst_10 = arith.constant 9.99999993E-9 : f32
    %26 = vector.broadcast %cst_10 : f32 to vector<1x128xf32>
    %27 = arith.maximumf %25, %26 : vector<1x128xf32>
    %28 = math.rsqrt %27 : vector<1x128xf32>
    %cst_11 = arith.constant 2.82842708 : f32
    %29 = vector.broadcast %cst_11 : f32 to vector<1x128xf32>
    %30 = arith.mulf %29, %28 : vector<1x128xf32>
    %31 = vector.broadcast %30 : vector<1x128xf32> to vector<8x128xf32>
    %32 = arith.mulf %22, %31 : vector<8x128xf32>
    %33 = arith.negf %32 : vector<8x128xf32>
    %34 = math.exp %33 : vector<8x128xf32>
    %cst_12 = arith.constant 1.000000e+00 : f32
    %35 = vector.broadcast %cst_12 : f32 to vector<8x128xf32>
    %36 = arith.addf %35, %34 : vector<8x128xf32>
    %37 = arith.divf %35, %36 : vector<8x128xf32>
    %38 = arith.mulf %32, %37 : vector<8x128xf32>
    %c16_i32 = arith.constant 16 : i32
    %39 = vector.broadcast %c16_i32 : i32 to vector<1x128xi32>
    %40 = arith.cmpi slt, %2, %39 : vector<1x128xi32>
    %cst_13 = arith.constant 0.000000e+00 : f32
    %41 = vector.shape_cast %40 : vector<1x128xi1> to vector<1x128xi1>
    %42 = vector.broadcast %41 : vector<1x128xi1> to vector<8x128xi1>
    %43 = vector.broadcast %cst_13 : f32 to vector<8x128xf32>
    %44 = arith.select %42, %38, %43 : vector<8x128xi1>, vector<8x128xf32>
    %c1_i32_14 = arith.constant 1 : i32
    %45 = tpu.dynamic_rotate %44 by %c1_i32_14 dim 1 : vector<8x128xf32>, i32 -> vector<8x128xf32>
    %cst_15 = arith.constant 0.000000e+00 : f32
    %46 = vector.shape_cast %4 : vector<1x128xi1> to vector<1x128xi1>
    %47 = vector.broadcast %46 : vector<1x128xi1> to vector<8x128xi1>
    %48 = vector.broadcast %cst_15 : f32 to vector<8x128xf32>
    %49 = arith.select %47, %48, %45 : vector<8x128xi1>, vector<8x128xf32>
    %c127_i32_16 = arith.constant 127 : i32
    %50 = tpu.dynamic_rotate %44 by %c127_i32_16 dim 1 : vector<8x128xf32>, i32 -> vector<8x128xf32>
    %cst_17 = arith.constant 0.000000e+00 : f32
    %51 = vector.shape_cast %6 : vector<1x128xi1> to vector<1x128xi1>
    %52 = vector.broadcast %51 : vector<1x128xi1> to vector<8x128xi1>
    %53 = vector.broadcast %cst_17 : f32 to vector<8x128xf32>
    %54 = arith.select %52, %53, %50 : vector<8x128xi1>, vector<8x128xf32>
    %55 = tpu.concatenate %49, %44, %54 in 0 : vector<8x128xf32>, vector<8x128xf32>, vector<8x128xf32> -> vector<24x128xf32>
    %c0_18 = arith.constant 0 : index
    %c0_19 = arith.constant 0 : index
    %56 = vector.load %arg4[%c0_18, %c0_19] : memref<8x24xf32, #tpu.memory_space<vmem>>, vector<8x24xf32>
    %cst_20 = arith.constant dense<0.000000e+00> : vector<8x128xf32>
    %57 = tpu.matmul %56, %55, %cst_20 {dimension_numbers = #tpu.dot_dimension_numbers<[1], [0], [0], [1], [0, 0, 1, 1], [], []>} : vector<8x24xf32>, vector<24x128xf32>, vector<8x128xf32> -> vector<8x128xf32>
    %c0_21 = arith.constant 0 : index
    %c0_22 = arith.constant 0 : index
    %58 = vector.load %arg5[%c0_21, %c0_22] : memref<8x1xf32, #tpu.memory_space<vmem>>, vector<8x1xf32>
    %59 = vector.broadcast %58 : vector<8x1xf32> to vector<8x128xf32>
    %60 = arith.addf %57, %59 : vector<8x128xf32>
    %61 = arith.mulf %60, %60 : vector<8x128xf32>
    %cst_23 = arith.constant dense<0.000000e+00> : vector<128xf32>
    %62 = vector.multi_reduction <add>, %61, %cst_23 [0] : vector<8x128xf32> to vector<128xf32>
    %63 = vector.shape_cast %62 : vector<128xf32> to vector<1x128xf32>
    %cst_24 = arith.constant 9.99999993E-9 : f32
    %64 = vector.broadcast %cst_24 : f32 to vector<1x128xf32>
    %65 = arith.maximumf %63, %64 : vector<1x128xf32>
    %66 = math.rsqrt %65 : vector<1x128xf32>
    %cst_25 = arith.constant 2.82842708 : f32
    %67 = vector.broadcast %cst_25 : f32 to vector<1x128xf32>
    %68 = arith.mulf %67, %66 : vector<1x128xf32>
    %69 = vector.broadcast %68 : vector<1x128xf32> to vector<8x128xf32>
    %70 = arith.mulf %60, %69 : vector<8x128xf32>
    %71 = arith.negf %70 : vector<8x128xf32>
    %72 = math.exp %71 : vector<8x128xf32>
    %cst_26 = arith.constant 1.000000e+00 : f32
    %73 = vector.broadcast %cst_26 : f32 to vector<8x128xf32>
    %74 = arith.addf %73, %72 : vector<8x128xf32>
    %75 = arith.divf %73, %74 : vector<8x128xf32>
    %76 = arith.mulf %70, %75 : vector<8x128xf32>
    %c16_i32_27 = arith.constant 16 : i32
    %77 = vector.broadcast %c16_i32_27 : i32 to vector<1x128xi32>
    %78 = arith.cmpi slt, %2, %77 : vector<1x128xi32>
    %cst_28 = arith.constant 0.000000e+00 : f32
    %79 = vector.shape_cast %78 : vector<1x128xi1> to vector<1x128xi1>
    %80 = vector.broadcast %79 : vector<1x128xi1> to vector<8x128xi1>
    %81 = vector.broadcast %cst_28 : f32 to vector<8x128xf32>
    %82 = arith.select %80, %76, %81 : vector<8x128xi1>, vector<8x128xf32>
    %cst_29 = arith.constant dense<0.000000e+00> : vector<8xf32>
    %83 = vector.multi_reduction <add>, %82, %cst_29 [1] : vector<8x128xf32> to vector<8xf32>
    %84 = vector.shape_cast %83 : vector<8xf32> to vector<8x1xf32>
    %cst_30 = arith.constant 6.250000e-02 : f32
    %85 = vector.broadcast %cst_30 : f32 to vector<8x1xf32>
    %86 = arith.mulf %84, %85 : vector<8x1xf32>
    %c0_31 = arith.constant 0 : index
    %c0_32 = arith.constant 0 : index
    %87 = vector.load %arg6[%c0_31, %c0_32] : memref<16x8xf32, #tpu.memory_space<vmem>>, vector<16x8xf32>
    %cst_33 = arith.constant dense<0.000000e+00> : vector<16x1xf32>
    %88 = tpu.matmul %87, %86, %cst_33 {dimension_numbers = #tpu.dot_dimension_numbers<[1], [0], [0], [1], [0, 0, 1, 1], [], []>} : vector<16x8xf32>, vector<8x1xf32>, vector<16x1xf32> -> vector<16x1xf32>
    %c0_34 = arith.constant 0 : index
    %c0_35 = arith.constant 0 : index
    %89 = vector.load %arg7[%c0_34, %c0_35] : memref<16x1xf32, #tpu.memory_space<vmem>>, vector<16x1xf32>
    %90 = arith.addf %88, %89 : vector<16x1xf32>
    %91 = arith.negf %90 : vector<16x1xf32>
    %92 = math.exp %91 : vector<16x1xf32>
    %cst_36 = arith.constant 1.000000e+00 : f32
    %93 = vector.broadcast %cst_36 : f32 to vector<16x1xf32>
    %94 = arith.addf %93, %92 : vector<16x1xf32>
    %95 = arith.divf %93, %94 : vector<16x1xf32>
    %96 = arith.mulf %90, %95 : vector<16x1xf32>
    %c0_37 = arith.constant 0 : index
    %c0_38 = arith.constant 0 : index
    %97 = vector.load %arg8[%c0_37, %c0_38] : memref<8x16xf32, #tpu.memory_space<vmem>>, vector<8x16xf32>
    %cst_39 = arith.constant dense<0.000000e+00> : vector<8x1xf32>
    %98 = tpu.matmul %97, %96, %cst_39 {dimension_numbers = #tpu.dot_dimension_numbers<[1], [0], [0], [1], [0, 0, 1, 1], [], []>} : vector<8x16xf32>, vector<16x1xf32>, vector<8x1xf32> -> vector<8x1xf32>
    %c0_40 = arith.constant 0 : index
    %c0_41 = arith.constant 0 : index
    %99 = vector.load %arg9[%c0_40, %c0_41] : memref<8x1xf32, #tpu.memory_space<vmem>>, vector<8x1xf32>
    %100 = arith.addf %98, %99 : vector<8x1xf32>
    %101 = arith.negf %100 : vector<8x1xf32>
    %102 = math.exp %101 : vector<8x1xf32>
    %cst_42 = arith.constant 1.000000e+00 : f32
    %103 = vector.broadcast %cst_42 : f32 to vector<8x1xf32>
    %104 = arith.addf %103, %102 : vector<8x1xf32>
    %105 = arith.divf %103, %104 : vector<8x1xf32>
    %106 = vector.broadcast %105 : vector<8x1xf32> to vector<8x128xf32>
    %107 = arith.mulf %82, %106 : vector<8x128xf32>
    %c0_43 = arith.constant 0 : index
    %c0_44 = arith.constant 0 : index
    %108 = vector.load %arg10[%c0_43, %c0_44] : memref<8x8xf32, #tpu.memory_space<vmem>>, vector<8x8xf32>
    %cst_45 = arith.constant dense<0.000000e+00> : vector<8x128xf32>
    %109 = tpu.matmul %108, %1, %cst_45 {dimension_numbers = #tpu.dot_dimension_numbers<[1], [0], [0], [1], [0, 0, 1, 1], [], []>} : vector<8x8xf32>, vector<8x128xf32>, vector<8x128xf32> -> vector<8x128xf32>
    %c0_46 = arith.constant 0 : index
    %c0_47 = arith.constant 0 : index
    %110 = vector.load %arg11[%c0_46, %c0_47] : memref<8x1xf32, #tpu.memory_space<vmem>>, vector<8x1xf32>
    %111 = vector.broadcast %110 : vector<8x1xf32> to vector<8x128xf32>
    %112 = arith.addf %109, %111 : vector<8x128xf32>
    %113 = arith.addf %107, %112 : vector<8x128xf32>
    %c0_48 = arith.constant 0 : index
    %c0_49 = arith.constant 0 : index
    %c0_50 = arith.constant 0 : index
    %114 = vector.load %arg12[%c0_48, %c0_49, %c0_50] : memref<1x8x128xf32, #tpu.memory_space<vmem>>, vector<1x8x128xf32>
    %115 = vector.shape_cast %114 : vector<1x8x128xf32> to vector<8x128xf32>
    %116 = vector.shape_cast %113 : vector<8x128xf32> to vector<1x8x128xf32>
    tpu.vector_store %arg12[%c0_48, %c0_49, %c0_50], %116 {strides = array<i32>} : memref<1x8x128xf32, #tpu.memory_space<vmem>>, vector<1x8x128xf32>,
    return
  }
  func.func @transform_0(%arg0: i32) -> (i32, i32, i32) {
    %c0_i32 = arith.constant 0 : i32
    %c0_i32_0 = arith.constant 0 : i32
    %c0_i32_1 = arith.constant 0 : i32
    return %arg0, %c0_i32, %c0_i32_0 : i32, i32, i32
  }
  func.func @transform_1(%arg0: i32) -> (i32, i32) {
    %c0_i32 = arith.constant 0 : i32
    %c0_i32_0 = arith.constant 0 : i32
    %c0_i32_1 = arith.constant 0 : i32
    return %c0_i32, %c0_i32_0 : i32, i32
  }
  func.func @transform_2(%arg0: i32) -> (i32, i32) {
    %c0_i32 = arith.constant 0 : i32
    %c0_i32_0 = arith.constant 0 : i32
    %c0_i32_1 = arith.constant 0 : i32
    return %c0_i32, %c0_i32_0 : i32, i32
  }
  func.func @transform_3(%arg0: i32) -> (i32, i32) {
    %c0_i32 = arith.constant 0 : i32
    %c0_i32_0 = arith.constant 0 : i32
    %c0_i32_1 = arith.constant 0 : i32
    return %c0_i32, %c0_i32_0 : i32, i32
  }
  func.func @transform_4(%arg0: i32) -> (i32, i32) {
    %c0_i32 = arith.constant 0 : i32
    %c0_i32_0 = arith.constant 0 : i32
    %c0_i32_1 = arith.constant 0 : i32
    return %c0_i32, %c0_i32_0 : i32, i32
  }
  func.func @transform_5(%arg0: i32) -> (i32, i32) {
    %c0_i32 = arith.constant 0 : i32
    %c0_i32_0 = arith.constant 0 : i32
    %c0_i32_1 = arith.constant 0 : i32
    return %c0_i32, %c0_i32_0 : i32, i32
  }
  func.func @transform_6(%arg0: i32) -> (i32, i32) {
    %c0_i32 = arith.constant 0 : i32
    %c0_i32_0 = arith.constant 0 : i32
    %c0_i32_1 = arith.constant 0 : i32
    return %c0_i32, %c0_i32_0 : i32, i32
  }
  func.func @transform_7(%arg0: i32) -> (i32, i32) {
    %c0_i32 = arith.constant 0 : i32
    %c0_i32_0 = arith.constant 0 : i32
    %c0_i32_1 = arith.constant 0 : i32
    return %c0_i32, %c0_i32_0 : i32, i32
  }
  func.func @transform_8(%arg0: i32) -> (i32, i32) {
    %c0_i32 = arith.constant 0 : i32
    %c0_i32_0 = arith.constant 0 : i32
    %c0_i32_1 = arith.constant 0 : i32
    return %c0_i32, %c0_i32_0 : i32, i32
  }
  func.func @transform_9(%arg0: i32) -> (i32, i32) {
    %c0_i32 = arith.constant 0 : i32
    %c0_i32_0 = arith.constant 0 : i32
    %c0_i32_1 = arith.constant 0 : i32
    return %c0_i32, %c0_i32_0 : i32, i32
  }
  func.func @transform_10(%arg0: i32) -> (i32, i32) {
    %c0_i32 = arith.constant 0 : i32
    %c0_i32_0 = arith.constant 0 : i32
    %c0_i32_1 = arith.constant 0 : i32
    return %c0_i32, %c0_i32_0 : i32, i32
  }
  func.func @transform_11(%arg0: i32) -> (i32, i32, i32) {
    %c0_i32 = arith.constant 0 : i32
    %c0_i32_0 = arith.constant 0 : i32
    %c0_i32_1 = arith.constant 0 : i32
    return %arg0, %c0_i32, %c0_i32_0 : i32, i32, i32
  }
}

</mosaic_0001>

<bundles_post_ra>
// kernel: tpu_custom_call.1
= control target key start
LH: loop header
LB: loop body
LE: loop exit
PB: predicated region body
PF: predicated region fallthrough
CT: control target
= control target key end

     0   :  { %s1407_s0 = inlined_call_operand.vmem [shape: f32[2,8,128], index: 0, kind: input, shape index: {}]   ;;  %s1408_s1 = inlined_call_operand.vmem [shape: f32[8,24], index: 1, kind: input, shape index: {}]   ;;  %s1409_s2 = inlined_call_operand.vmem [shape: f32[8,1], index: 2, kind: input, shape index: {}]   ;;  %s1410_s3 = inlined_call_operand.vmem [shape: f32[8,24], index: 3, kind: input, shape index: {}]   ;;  %s1411_s4 = inlined_call_operand.vmem [shape: f32[8,1], index: 4, kind: input, shape index: {}]   ;;  %s1412_s5 = inlined_call_operand.vmem [shape: f32[16,8], index: 5, kind: input, shape index: {}]   ;;  %s1413_s6 = inlined_call_operand.vmem [shape: f32[16,1], index: 6, kind: input, shape index: {}]   ;;  %s1414_s7 = inlined_call_operand.vmem [shape: f32[8,16], index: 7, kind: input, shape index: {}]   ;;  %s1415_s8 = inlined_call_operand.vmem [shape: f32[8,1], index: 8, kind: input, shape index: {}]   ;;  %s1416_s9 = inlined_call_operand.vmem [shape: f32[8,8], index: 9, kind: input, shape index: {}]   ;;  %s1417_s10 = inlined_call_operand.vmem [shape: f32[8,1], index: 10, kind: input, shape index: {}]   ;;  %s1418_s11 = inlined_call_operand.hbm [shape: f32[2,8,128], index: 11, kind: output, shape index: {}]  }
   0x1   :  { %1419 = sst [smem:[#allocation5_spill]] %s1407_s0 }
   0x2   :  { %1420 = sst [smem:[#allocation6_spill]] %s1408_s1 }
   0x3   :  { %16 = vsyncpa [#allocation3], 0 }
   0x4   :  { %18 = vsyncpa [#allocation3 + $0x1], 0  ;;  %s1232_s17 = smov 0   ;;  %s1234_s18 = smov 0  }
   0x5   :  { %s1236_s19 = smov 0   ;;  %s1238_s20 = smov 0  }
   0x6 LB: > { %s1253_s21 = sadd.s32 4294967295, %s1164_s20   ;;  %s951_s22 = sadd.s32 4294967294, %s1164_s20   ;;  %s1164_s20 = sphi %s1238_s20, %s1428_s20   ;;  %s1160_s19 = sphi %s1236_s19, %s1427_s19   ;;  %s1156_s18 = sphi %s1234_s18, %s1426_s18   ;;  %s1152_s17 = sphi %s1232_s17, %s1425_s17  }
   0x7   : > { %s1257_s23 = sadd.s32 1, %s1164_s20   ;;  %s267_s24 = sadd.s32 1, %s1160_s19 }
   0x8   : > { %s264_s25 = ssub.s32 %s1164_s20, %s1257_s23  ;;  %p277_p0 = scmp.ne.s32.totalorder %s1160_s19, %s1156_s18 }
   0x9   : > { %p265_p1 = scmp.eq.s32.totalorder %s264_s25, 0  ;;  %p278_p2 = scmp.eq.s32.totalorder %s1253_s21, 1 }
   0xa   : > { %p283_p3 = scmp.ne.s32.totalorder %s1156_s18, %s1152_s17  ;;  %p284_p4 = scmp.eq.s32.totalorder %s951_s22, 1 }
   0xb   : > { %s1268_s26 = scalar_select %p265_p1, %s1160_s19, %s267_s24  }
   0xc   : > { %p1270_p5 = por %p278_p2, %p277_p0  ;;  %p1274_p6 = por %p284_p4, %p283_p3 }
   0xd   : > { %p954_p7 = scmp.ge.s32.totalorder %s1164_s20, 1  ;;  %p339_p8 = scmp.lt.s32.totalorder %s1164_s20, 3 }
   0xf   : > { %p340_p9 = pnand %p954_p7, %p339_p8 }
  0x10   : > { %p378_p10 = scmp.lt.s32.totalorder (!%p340_p9), %s1253_s21, 1  ;;  %s1423_s0 = sld [smem:[#allocation5_spill]] (!%p340_p9) }
  0x11   : > { %343 = sbr.rel (%p340_p9) target bundleno = 1541 (0x605), region = 64  ;;  %s1169_s22 = smov (!%p340_p9), 127  }
  0x12   : > { %s1170_s24 = smov (!%p340_p9), 1   ;;  %s1424_s1 = sld [smem:[#allocation6_spill]] (!%p340_p9) }
  0x13   : > { %s375_s30 = sand.u32 (!%p340_p9), 1, %s1156_s18  }
  0x14   : > { %s879_s25 = scalar_lea.sflag (!%p340_p9), [#allocation3], %s375_s30 }
  0x16   : > { %v1166_v0 = vmov 0.0   ;;  %vm1167_vm0 = vmmov 0   ;;  %v398_v1 = vld [vmem:[%s1409_s2] sm:$0xff]  ;;  %s379_s12 = scalar_select %p378_p10, %s1253_s21, 1  ;;  %v1168_v2 = vmov 0   ;;  %v383_v4 = vlaneseq  ;;  %v609_v58 = vld [vmem:[%s1412_s5 + $0x8] sm:$0xff] }
  0x17   : > { %999 = vmatprep.subr.mxu0 %v1166_v0  ;;  %1005 = vmatprep.mubr.msk.f32.mxu0 %vm1167_vm0, %v1166_v0  ;;  %vm404_vm3 = vcmask 195584   ;;  %v507_v30 = vld [vmem:[%s1411_s4] sm:$0xff]  ;;  %vm612_vm5 = vcmask 64512   ;;  %v611_v60 = vld [vmem:[%s1413_s6 + $0x8] sm:$0xff]  ;;  %vm710_vm6 = vcmask 130048  }
  0x18   : > { %1078 = vset.pattern.permute.xlu1 %v1168_v2  ;;  %1008 = vmatprep.subr.mxu1 %v1166_v0  ;;  %s956_s13 = sshll.u32 %s379_s12, 3  ;;  %v1300_v5 = vand.u32 127, %v383_v4  ;;  %v397_v7 = vld [vmem:[%s1424_s1] sm:$0xff]  ;;  %s955_s12 = sshll.u32 %s375_s30, 3 }
  0x19   : > { %401 = vperm.xlu1 %1078, %v398_v1   ;;  %1014 = vmatprep.mubr.msk.f32.mxu1 %vm1167_vm0, %v1166_v0  ;;  %s381_s16 = scalar_lea.vmem %s1423_s0, %s956_s13  ;;  %v506_v32 = vld [vmem:[%s1410_s3] sm:$0xff]  ;;  %s978_s13 = sshll.u32 %s1253_s21, 7 }
  0x1a   : > { %1079 = vset.pattern.permute.xlu0 %v1168_v2  ;;  %v1294_v3 = vld [vmem:[%s381_s16] sm:$0xff]  ;;  %vm981_vm1 = vcmp.ne.s32.totalorder %v1300_v5, 127  ;;  %vm982_vm2 = vcmp.ne.s32.totalorder %v1300_v5, 0  ;;  %vm496_vm4 = vcmp.lt.s32.totalorder %v1300_v5, 16  ;;  %s377_s14 = scalar_lea.vmem [#allocation2], %s955_s12  ;;  %s1171_s0 = smov [#allocation2]  }
  0x1b   : > { %392 = vrot.lane.b32.xlu0 %v1294_v3, %s1169_s22  ;;  %v608_v55 = vld [vmem:[%s1412_s5] sm:$0xff]  ;;  %s892_s15 = sshll.u32 %s377_s14, 4  ;;  %s1108_s21 = sshll.u32 %s1171_s0, 4  ;;  %s893_s15 = int_to_ptr.vmem [resolvable:$true] %s892_s15  ;;  %s1109_s21 = int_to_ptr.vmem [resolvable:$false] %s1108_s21 }
  0x1c   : > { %v796_v59 = vld [vmem:[%s1416_s9] sm:$0xff]  ;;  %s1104_s29 = scalar_lea.vmem %s893_s15, 128  ;;  %s1110_s12 = scalar_lea.vmem %s1109_s21, 256 }
  0x1d   : > { %v610_v62 = vld [vmem:[%s1413_s6] sm:$0xff]  ;;  %p1105_p11 = scmp.ne.s32.totalorder %s893_s15, %s1104_s29  ;;  %p1111_p0 = scmp.lt.s32.totalorder %s893_s15, %s1109_s21 }
  0x1e   : > { %p1112_p1 = scmp.lt.s32.totalorder %s1110_s12, %s1104_s29 }
  0x1f   : > { %387 = vrot.lane.b32.xlu0 %v1294_v3, %s1170_s24  ;;  %p1106_p12 = pnand %p1105_p11, %p1270_p5 }
  0x20   : > { %p1113_p2 = por %p1112_p1, %p1111_p0 }
  0x21   : > { %p1107_p13 = pneg %p1106_p12 }
  0x23   : > { %p1114_p3 = pnand %p1113_p2, %p1107_p13 }
  0x8d   : > { %v393_v6 = vpop.permute.xlu0 %392 }
  0x8e   : > { %1000 = vmatpush3.msk.msra.mxu0 %vm981_vm1, %v393_v6 }
  0x8f   : > { %1001 = vmatprep.subr.mxu0 %v1166_v0 }
  0x90   : > { %1002 = vmatpush3.msra.mxu0 %v1294_v3 }
  0x91   : > { %1003 = vmatprep.subr.mxu0 %v1166_v0  ;;  %v388_v8 = vpop.permute.xlu0 %387 }
  0x92   : > { %1004 = vmatpush3.msk.msra.mxu0 %vm982_vm2, %v388_v8 }
  0x93   : > { %1006 = vmatmul.mubr.msk.f32.vlgmr.msra.gmra.mxu0 %vm404_vm3, %v397_v7 }
  0x94   : > { %v402_v9 = vpop.permute.xlu1 %401  ;;  %1019 = vmatprep.mubr.msk.f32.mxu0 %vm612_vm5, %v608_v55 }
 0x153   : > { %v474_v10 = vpop.f32.mrf.mxu0 }
 0x154   : > { %v475_v11 = vadd.f32 %v474_v10, %v402_v9 }
 0x155   : > { %v1007_v12 = vpop.f32.mrf.mxu0 }
 0x156   : > { %v478_v13 = vmul.f32 %v475_v11, %v475_v11 }
 0x158   : > { %v479_v14 = vrot.slane %v478_v13, 4 }
 0x15a   : > { %v480_v15 = vadd.f32 %v479_v14, %v478_v13  ;;  %v708_v13 = vld [vmem:[%s1414_s7] sm:$0xff] }
 0x15b   : > { %v709_v14 = vld [vmem:[%s1415_s8] sm:$0xff] }
 0x15c   : > { %v481_v16 = vrot.slane %v480_v15, 2 }
 0x15e   : > { %v482_v17 = vadd.f32 %v481_v16, %v480_v15 }
 0x160   : > { %v483_v18 = vrot.slane %v482_v17, 1 }
 0x162   : > { %v484_v19 = vadd.f32 %v483_v18, %v482_v17 }
 0x164   : > { %v485_v20 = vmax.f32 %v484_v19, 1e-08 }
 0x166   : > { %1080 = vrsqrt.f32 %v485_v20 }
 0x173   : > { %v1081_v21 = vpop.eup %1080 }
 0x174   : > { %v487_v22 = vmul.f32 2.828427, %v1081_v21 }
 0x176   : > { %v488_v23 = vmul.f32 %v487_v22, %v475_v11 }
 0x178   : > { %v962_v24 = vmul.f32 -1.442695, %v488_v23 }
 0x17a   : > { %1082 = vpow2.f32 %v962_v24 }
 0x187   : > { %v1083_v25 = vpop.eup %1082 }
 0x188   : > { %v492_v26 = vadd.f32 1.0, %v1083_v25 }
 0x18a   : > { %1084 = vrcp.f32 %v492_v26 }
 0x197   : > { %v1085_v27 = vpop.eup %1084 }
 0x198   : > { %v495_v28 = vmul.f32 %v1085_v27, %v488_v23 }
 0x19a   : > { %v499_v29 = vsel %vm496_vm4, %v495_v28, 0.0 }
 0x19b   : > { %500 = vrot.lane.b32.xlu0 %v499_v29, %s1170_s24  ;;  %503 = vrot.lane.b32.xlu1 %v499_v29, %s1169_s22  ;;  %s890_s24 = scalar_lea.hbm %s1418_s11, %s978_s13 }
 0x19f   : > { %510 = vperm.xlu1 %1078, %v507_v30  }
 0x20d   : > { %v504_v31 = vpop.permute.xlu1 %503  ;;  %v501_v33 = vpop.permute.xlu0 %500 }
 0x20e   : > { %1009 = vmatpush3.msk.msra.mxu1 %vm981_vm1, %v504_v31 }
 0x20f   : > { %1010 = vmatprep.subr.mxu1 %v1166_v0 }
 0x210   : > { %1011 = vmatpush3.msk.msra.mxu1 %vm496_vm4, %v495_v28 }
 0x211   : > { %1012 = vmatprep.subr.mxu1 %v1166_v0 }
 0x212   : > { %1013 = vmatpush3.msk.msra.mxu1 %vm982_vm2, %v501_v33 }
 0x213   : > { %1015 = vmatmul.mubr.msk.f32.vlgmr.msra.gmra.mxu1 %vm404_vm3, %v506_v32  ;;  %1022 = vmatprep.subr.mxu1 %v1166_v0 }
 0x214   : > { %1026 = vmatprep.mubr.msk.f32.mxu1 %vm1167_vm0, %v1166_v0 }
 0x21a   : > { %v511_v34 = vpop.permute.xlu1 %510 }
 0x2d3   : > { %v582_v35 = vpop.f32.mrf.mxu1 }
 0x2d4   : > { %v583_v36 = vadd.f32 %v582_v35, %v511_v34 }
 0x2d5   : > { %v1016_v37 = vpop.f32.mrf.mxu1 }
 0x2d6   : > { %v586_v38 = vmul.f32 %v583_v36, %v583_v36 }
 0x2d8   : > { %v587_v39 = vrot.slane %v586_v38, 4 }
 0x2da   : > { %v588_v40 = vadd.f32 %v587_v39, %v586_v38 }
 0x2dc   : > { %v589_v41 = vrot.slane %v588_v40, 2 }
 0x2de   : > { %v590_v42 = vadd.f32 %v589_v41, %v588_v40 }
 0x2e0   : > { %v591_v43 = vrot.slane %v590_v42, 1 }
 0x2e2   : > { %v592_v44 = vadd.f32 %v591_v43, %v590_v42 }
 0x2e4   : > { %v593_v45 = vmax.f32 %v592_v44, 1e-08 }
 0x2e6   : > { %1086 = vrsqrt.f32 %v593_v45 }
 0x2f3   : > { %v1087_v46 = vpop.eup %1086 }
 0x2f4   : > { %v595_v47 = vmul.f32 2.828427, %v1087_v46 }
 0x2f6   : > { %v596_v48 = vmul.f32 %v595_v47, %v583_v36 }
 0x2f8   : > { %v969_v49 = vmul.f32 -1.442695, %v596_v48 }
 0x2fa   : > { %1088 = vpow2.f32 %v969_v49 }
 0x307   : > { %v1089_v50 = vpop.eup %1088 }
 0x308   : > { %v600_v51 = vadd.f32 1.0, %v1089_v50 }
 0x30a   : > { %1090 = vrcp.f32 %v600_v51 }
 0x317   : > { %v1091_v52 = vpop.eup %1090 }
 0x318   : > { %v603_v53 = vmul.f32 %v1091_v52, %v596_v48 }
 0x31a   : > { %v1340_v54 = vsel %vm496_vm4, %v603_v53, 0.0 }
 0x31b   : > { %605 = vadd.xlane.f32.xlu0 %v1340_v54 }
 0x3a4   : > { %v606_v56 = vpop.xlane.xlu0 %605 }
 0x3a5   : > { %v607_v57 = vmul.f32 0.0625, %v606_v56 }
 0x3a7   : > { %1017 = vmatprep.subr.mxu0 %v607_v57 }
 0x3a8   : > { %1018 = vmatpush3.msra.mxu0 %v607_v57 }
 0x3a9   : > { %1020 = vmatmul.mubr.msk.f32.vlgmr.msra.gmra.mxu0 %vm612_vm5, %v609_v58  ;;  %1029 = vmatprep.subr.mxu0 %v1166_v0 }
 0x3aa   : > { %1030 = vmatpush3.msra.mxu0 %v1294_v3  ;;  %1031 = vmatprep.mubr.msk.f32.mxu0 %vm1167_vm0, %v1166_v0 }
 0x3ad   : > { %1032 = vmatmul.mubr.msk.f32.vlgmr.msra.gmra.mxu0 %vm612_vm5, %v796_v59 }
 0x469   : > { %v1021_v61 = vpop.f32.mrf.mxu0 }
 0x46a   : > { %v691_v63 = vadd.f32 %v1021_v61, %v611_v60 }
 0x46b   : > { %v685_v1 = vpop.f32.mrf.mxu0 }
 0x46c   : > { %v973_v2 = vmul.f32 -1.442695, %v691_v63  ;;  %v686_v3 = vadd.f32 %v685_v1, %v610_v62 }
 0x46d   : > { %v872_v21 = vpop.f32.mrf.mxu0 }
 0x46e   : > { %1092 = vpow2.f32 %v973_v2  ;;  %v972_v4 = vmul.f32 -1.442695, %v686_v3 }
 0x46f   : > { %v1033_v22 = vpop.f32.mrf.mxu0 }
 0x470   : > { %1094 = vpow2.f32 %v972_v4 }
 0x47b   : > { %v1093_v5 = vpop.eup %1092 }
 0x47c   : > { %v701_v6 = vadd.f32 1.0, %v1093_v5 }
 0x47d   : > { %v1095_v7 = vpop.eup %1094 }
 0x47e   : > { %1096 = vrcp.f32 %v701_v6  ;;  %v700_v8 = vadd.f32 1.0, %v1095_v7 }
 0x480   : > { %1098 = vrcp.f32 %v700_v8 }
 0x48b   : > { %v1097_v9 = vpop.eup %1096 }
 0x48c   : > { %v707_v10 = vmul.f32 %v1097_v9, %v691_v63 }
 0x48d   : > { %v1099_v11 = vpop.eup %1098 }
 0x48e   : > { %v706_v12 = vmul.f32 %v1099_v11, %v686_v3  ;;  %1023 = vmatpush3.msra.mxu1 %v707_v10 }
 0x48f   : > { %1024 = vmatprep.subr.mxu1 %v1166_v0  ;;  %v797_v0 = vld [vmem:[%s1417_s10] sm:$0xff] }
 0x490   : > { %1025 = vmatpush3.msra.mxu1 %v706_v12 }
 0x491   : > { %1027 = vmatmul.mubr.msk.f32.vlgmr.msra.gmra.mxu1 %vm710_vm6, %v708_v13 }
 0x551   : > { %v780_v15 = vpop.f32.mrf.mxu1 }
 0x552   : > { %v781_v16 = vadd.f32 %v780_v15, %v709_v14 }
 0x553   : > { %v1028_v17 = vpop.f32.mrf.mxu1 }
 0x554   : > { %v975_v18 = vmul.f32 -1.442695, %v781_v16 }
 0x556   : > { %1100 = vpow2.f32 %v975_v18 }
 0x563   : > { %v1101_v19 = vpop.eup %1100 }
 0x564   : > { %v787_v20 = vadd.f32 1.0, %v1101_v19 }
 0x566   : > { %1102 = vrcp.f32 %v787_v20 }
 0x573   : > { %v1103_v23 = vpop.eup %1102 }
 0x574   : > { %792 = vperm.xlu1 %1078, %v1103_v23  }
 0x578   : > { %800 = vperm.xlu1 %1078, %v797_v0  }
 0x5ef   : > { %v793_v24 = vpop.permute.xlu1 %792 }
 0x5f0   : > { %v795_v26 = vmul.f32 %v793_v24, %v1340_v54 }
 0x5f3   : > { %v801_v25 = vpop.permute.xlu1 %800 }
 0x5f4   : > { %v873_v27 = vadd.f32 %v872_v21, %v801_v25 }
 0x5f6   : > { %v876_v28 = vadd.f32 %v873_v27, %v795_v26 }
 0x5f8   : > { %877 = vst [vmem:[%s377_s14] sm:$0xff] %v876_v28 }
 0x5f9   : > { %1117 = shalt.err (!%p1114_p3)
}
 0x5fa   : > { %s1118_s1 = scalar_lea.hbm %s890_s24, 128  ;;  %s1122_s14 = scalar_lea.hbm %s1418_s11, 256 }
 0x5fb   : > { %p1119_p4 = scmp.ne.s32.totalorder %s890_s24, %s1118_s1  ;;  %p1123_p9 = scmp.lt.s32.totalorder %s890_s24, %s1418_s11 }
 0x5fc   : > { %p1124_p10 = scmp.lt.s32.totalorder %s1122_s14, %s1118_s1 }
 0x5fd   : > { %p1120_p7 = pnand %p1119_p4, %p1270_p5 }
 0x5fe   : > { %p1125_p11 = por %p1124_p10, %p1123_p9 }
 0x5ff   : > { %p1121_p8 = pneg %p1120_p7 }
 0x601   : > { %p1126_p12 = pnand %p1125_p11, %p1121_p8 }
 0x603   : > { %1129 = shalt.err (!%p1126_p12)
}
 0x604   : > { %1034 = dma.vmem_to_hbm [thread:$0]  (%p1270_p5), %s893_s15, 128, %s890_s24, %s879_s25  }
 0x605 PF: > { %p1040_p13 = scmp.ge.s32.totalorder %s1164_s20, 2  ;;  %s904_s0 = sand.u32 1, %s1152_s17  }
 0x606   : > { %s905_s29 = scalar_lea.sflag [#allocation3], %s904_s0 }
 0x607   : > { %p1037_p0 = pnand %p1040_p13, %p1274_p6 }
 0x609   : > { %p1038_p1 = pneg %p1037_p0 }
 0x60b   : > { %1147 = dma.done.wait (%p1038_p1), %s905_s29, 128  }
 0x60c   : > { %1149 = vsyncadd (%p1038_p1), %s905_s29, 4294967168  ;;  %p21_p2 = scmp.ge.s32.totalorder %s1257_s23, 4   ;;  %s1425_s17 = smov %s1156_s18 }
 0x60d   : > { %s1426_s18 = smov %s1160_s19  ;;  %s1427_s19 = smov %s1268_s26 }
 0x60e   : > { %s1428_s20 = smov %s1257_s23  ;;  %23 = sbr.rel (!%p21_p2) target bundleno = 6 (0x6), region = 99 }
 0x613   :  { %910 = vsyncpa [#allocation3], 1 }
 0x614   :  { %912 = vsyncpa [#allocation3 + $0x1], 1 }

</bundles_post_ra>
